<compile_context>
chip_gen: v6e
topology: v6e:2x2x1
jax: 0.10.0
libtpu: 0.0.40
codegen_flags: <defaults>
</compile_context>

<pallas_src>
import jax
import jax.numpy as jnp
from jax.experimental import pallas as pl
from jax.experimental.pallas import tpu as pltpu


# ----------------------------------------------------------------------------
# Pallas kernel: pure pass-through of the current VMEM tile.
# ----------------------------------------------------------------------------
def _identity_kernel(x_ref, o_ref):
    o_ref[...] = x_ref[...]


# ----------------------------------------------------------------------------
# Static (trace-time) layout helpers.
# ----------------------------------------------------------------------------
def _cdiv(a: int, b: int) -> int:
    return -(-a // b)


_LANE_CANDIDATES = (4096, 2048, 1024, 512, 256, 128)
_MIN_ROWS = 8


def _sublane_multiple(dtype) -> int:
    # Sub-32-bit dtypes pack along sublanes: bf16 -> 16 rows/vreg, int8 -> 32.
    return max(8, 32 // jnp.dtype(dtype).itemsize)


def _choose_lane(total: int) -> int:
    """Pick a lane width (multiple of 128). Prefer the largest width that still
    leaves >= _MIN_ROWS rows; never place the whole flat array in one row."""
    divisors = [lane for lane in _LANE_CANDIDATES if total % lane == 0]
    for lane in divisors:                 # candidates listed largest-first
        if total // lane >= _MIN_ROWS:
            return lane
    if divisors:
        return divisors[-1]               # smallest dividing lane (128)
    return 128                            # not 128-divisible -> pad small tail


def _max_block_bytes() -> int:
    """Per-block byte budget; 4x (double-buffered in + out) must fit VMEM."""
    default = 4 * 1024 * 1024             # v5e-safe: 4x fits 16 MiB scoped default
    try:
        vmem = int(pltpu.get_tpu_info().vmem_capacity_bytes)
    except Exception:
        return default
    if vmem <= 96 * 1024 * 1024:
        # v7x: 64 MiB physical / 32 MiB scoped default -> 8 MiB blocks fit.
        return 8 * 1024 * 1024
    # 128 MiB physical is v5e or v6e; capacity alone can't tell them apart, so
    # keep the v5e-safe budget (1-4 MiB tiles already saturate the HBM copy).
    return default


def _choose_row_tile(rows: int, lane: int, itemsize: int, sub_mult: int,
                     max_block_bytes: int) -> int:
    """Power-of-two multiple of the sublane alignment, capped by the VMEM block
    budget, with >= 2 grid steps whenever there is enough work (v7x 2 TCs)."""
    if rows <= sub_mult:
        return rows                        # single full-extent block (always legal)
    max_rows = max(sub_mult, max_block_bytes // max(1, lane * itemsize))
    tile_r = sub_mult
    while tile_r * 2 <= max_rows and tile_r * 2 <= rows:
        tile_r *= 2
    # Ensure the "parallel" axis has at least 2 steps so both TensorCores on
    # v7x get work (no-op on v5e/v6e).
    while _cdiv(rows, tile_r) < 2 and tile_r > sub_mult:
        tile_r //= 2
    return tile_r


# ----------------------------------------------------------------------------
# Public wrappers.
# ----------------------------------------------------------------------------
def print_layer(name: str, x: jax.Array) -> jax.Array:
    """Fast path matching PrintLayer.forward: print shape, return x as-is.

    Recommended implementation: the op is an identity, so no kernel launch /
    HBM round-trip is needed at all.
    """
    # TODO(synk): under jit this prints once at trace time, not per forward
    # call (PyTorch prints on every call); there is no clean per-step equivalent.
    print(f"{name}: -> ", tuple(x.shape))
    return x


def print_layer_copy(name: str, x: jax.Array) -> jax.Array:
    """Identity that materializes a genuinely independent copy via Pallas."""
    print(f"{name}: -> ", tuple(x.shape))

    total = int(x.size)
    if total == 0:
        return x

    flat = x.reshape(-1)
    lane = _choose_lane(total)
    padded_total = _cdiv(total, lane) * lane
    if padded_total != total:
        # Non-128-divisible element count: pad the small tail so the kernel
        # sees a lane-dense slab (unmasked full-width vector stores).
        flat = jnp.pad(flat, (0, padded_total - total))
    rows = padded_total // lane
    x2d = flat.reshape(rows, lane)

    itemsize = x2d.dtype.itemsize
    sub_mult = _sublane_multiple(x2d.dtype)
    max_blk = _max_block_bytes()
    tile_r = _choose_row_tile(rows, lane, itemsize, sub_mult, max_blk)
    grid = (_cdiv(rows, tile_r),)          # ragged last block is masked by Pallas

    out2d = pl.pallas_call(
        _identity_kernel,
        out_shape=jax.ShapeDtypeStruct((rows, lane), x2d.dtype),
        grid=grid,
        in_specs=[pl.BlockSpec((tile_r, lane), lambda i: (i, 0))],
        out_specs=pl.BlockSpec((tile_r, lane), lambda i: (i, 0)),
        # Purely HBM-bound: read N bytes, write N bytes. Helps XLA scheduling.
        cost_estimate=pl.CostEstimate(
            flops=0, transcendentals=0, bytes_accessed=2 * x2d.nbytes),
        compiler_params=pltpu.CompilerParams(
            # Row tiles are independent -> shard across TensorCores on v7x.
            dimension_semantics=("parallel",),
            # Headroom over the 4x double-buffered in+out block footprint;
            # stays well under physical VMEM on every generation (v7x: 64 MiB).
            vmem_limit_bytes=4 * max_blk + (16 << 20),
        ),
    )(x2d)

    out_flat = out2d.reshape(-1)
    if padded_total != total:
        out_flat = out_flat[:total]
    return out_flat.reshape(x.shape)


# ----------------------------------------------------------------------------
# Demo / self-test.
# ----------------------------------------------------------------------------
if __name__ == "__main__":
    key = jax.random.PRNGKey(0)

    # Small NCHW input consistent with a conv-net layer: batch=2, channels=4,
    # spatial=16x16.
    x = jax.random.normal(key, (2, 4, 16, 16), dtype=jnp.float32)

    # Recommended fast path (no kernel): print shape, return x unchanged.
    y_fast = print_layer("print_layer", x)
    assert y_fast.shape == x.shape and y_fast.dtype == x.dtype

    # Materialized-copy path exercising the Pallas kernel (f32, 128-aligned).
    y = jax.block_until_ready(print_layer_copy("print_layer", x))
    assert y.shape == x.shape and y.dtype == x.dtype
    assert bool(jnp.all(y == x))

    # bf16 path (exercises sublane-packing alignment).
    xb = x.astype(jnp.bfloat16)
    yb = jax.block_until_ready(print_layer_copy("print_layer_bf16", xb))
    assert yb.shape == xb.shape and yb.dtype == xb.dtype
    assert bool(jnp.all(yb == xb))

    # Ragged path: element count not a multiple of 128 (exercises pad+slice).
    xr = jax.random.normal(jax.random.PRNGKey(0), (3, 5, 7), dtype=jnp.float32)
    yr = jax.block_until_ready(print_layer_copy("print_layer_ragged", xr))
    assert yr.shape == xr.shape and bool(jnp.all(yr == xr))

    # Larger activation (512 KiB) exercising a multi-step pipelined grid
    # (>= 2 steps, so both TensorCores get work on v7x).
    xl = jax.random.normal(jax.random.PRNGKey(0), (4, 8, 64, 64), dtype=jnp.float32)
    yl = jax.block_until_ready(print_layer_copy("print_layer_large", xl))
    assert yl.shape == xl.shape and bool(jnp.all(yl == xl))

    print("KERNEL_OK")
</pallas_src>

<mosaic_0001>
module attributes {stable_mosaic.version = 11 : i64} {
  func.func @_identity_kernel(%arg0: i32, %arg1: memref<8x256xf32, #tpu.memory_space<vmem>>, %arg2: memref<8x256xf32, #tpu.memory_space<vmem>>) attributes {dimension_semantics = [#tpu.dimension_semantics<parallel>], iteration_bounds = array<i64: 1>, scalar_prefetch = 0 : i64, scratch_operands = 0 : i64, tpu.core_type = #tpu.core_type<tc>, window_params = [{transform_indices = @transform_0, window_bounds = array<i64: 8, 256>}, {transform_indices = @transform_1, window_bounds = array<i64: 8, 256>}]} {
    %c0 = arith.constant 0 : index
    %c0_0 = arith.constant 0 : index
    %0 = vector.load %arg1[%c0, %c0_0] : memref<8x256xf32, #tpu.memory_space<vmem>>, vector<8x256xf32>
    %c0_1 = arith.constant 0 : index
    %c0_2 = arith.constant 0 : index
    %1 = vector.load %arg2[%c0_1, %c0_2] : memref<8x256xf32, #tpu.memory_space<vmem>>, vector<8x256xf32>
    tpu.vector_store %arg2[%c0_1, %c0_2], %0 {strides = array<i32>} : memref<8x256xf32, #tpu.memory_space<vmem>>, vector<8x256xf32>,
    return
  }
  func.func @transform_0(%arg0: i32) -> (i32, i32) {
    %c0_i32 = arith.constant 0 : i32
    %c0_i32_0 = arith.constant 0 : i32
    return %arg0, %c0_i32 : i32, i32
  }
  func.func @transform_1(%arg0: i32) -> (i32, i32) {
    %c0_i32 = arith.constant 0 : i32
    %c0_i32_0 = arith.constant 0 : i32
    return %arg0, %c0_i32 : i32, i32
  }
}

</mosaic_0001>

<bundles_post_ra>
// kernel: tpu_custom_call.1
= control target key start
LH: loop header
LB: loop body
LE: loop exit
PB: predicated region body
PF: predicated region fallthrough
CT: control target
= control target key end

     0   :  { %6 = vsyncpa [#allocation3], 0  ;;  %s104_s0 = inlined_call_operand.hbm [shape: f32[8,256], index: 0, kind: input, shape index: {}]   ;;  %s105_s1 = inlined_call_operand.hbm [shape: f32[8,256], index: 1, kind: output, shape index: {}]  }
   0x1   :  { %7 = vsyncpa [#allocation4], 0  ;;  %s86_s6 = smov [#allocation2]  }
   0x2   :  { %s14_s7 = sshll.u32 %s86_s6, 4  ;;  %s15_s7 = int_to_ptr.vmem [resolvable:$true] %s14_s7 }
   0x3   :  { %s50_s8 = scalar_lea.vmem %s15_s7, 256  ;;  %p55_p1 = scmp.lt.s32.totalorder %s15_s7, %s15_s7 }
   0x4   :  { %p51_p0 = scmp.ne.s32.totalorder %s15_s7, %s50_s8  ;;  %p56_p2 = scmp.lt.s32.totalorder %s50_s8, %s50_s8 }
   0x6   :  { %p57_p3 = por %p56_p2, %p55_p1 }
   0x8   :  { %p58_p4 = pnand %p57_p3, %p51_p0 }
   0xa   :  { %61 = shalt.err (!%p58_p4)
}
   0xb   :  { %17 = dma.hbm_to_vmem [thread:$0]  %s104_s0, 256, %s15_s7, [#allocation3]  }
   0xc   :  { %82 = dma.done.wait [#allocation3], 256  }
   0xd   :  { %83 = vsyncadd [#allocation3], 4294967040  ;;  %s87_s11 = smov [#allocation5]   ;;  %v21_v0 = vld [vmem:[#allocation2] sm:$0xff]  ;;  %v22_v1 = vld [vmem:[#allocation2 + $0x8] sm:$0xff] }
   0xe   :  { %s31_s12 = sshll.u32 %s87_s11, 4  ;;  %23 = vst [vmem:[#allocation5] sm:$0xff] %v21_v0  ;;  %24 = vst [vmem:[#allocation5 + $0x8] sm:$0xff] %v22_v1  ;;  %s32_s12 = int_to_ptr.vmem [resolvable:$true] %s31_s12 }
   0xf   :  { %s62_s13 = scalar_lea.vmem %s32_s12, 256  ;;  %p67_p6 = scmp.lt.s32.totalorder %s32_s12, %s32_s12 }
  0x10   :  { %p63_p5 = scmp.ne.s32.totalorder %s32_s12, %s62_s13  ;;  %p68_p7 = scmp.lt.s32.totalorder %s62_s13, %s62_s13 }
  0x12   :  { %p69_p8 = por %p68_p7, %p67_p6 }
  0x14   :  { %p70_p9 = pnand %p69_p8, %p63_p5 }
  0x16   :  { %73 = shalt.err (!%p70_p9)
}
  0x17   :  { %34 = dma.vmem_to_hbm [thread:$0]  %s32_s12, 256, %s105_s1, [#allocation4]  }
  0x18   :  { %84 = dma.done.wait [#allocation4], 256  }
  0x19   :  { %85 = vsyncadd [#allocation4], 4294967040 }
  0x1a   :  { %38 = vsyncpa [#allocation3], 1 }
  0x1b   :  { %39 = vsyncpa [#allocation4], 1 }

</bundles_post_ra>
